<compile_context>
chip_gen: v7x
topology: tpu7x:2x2x1
jax: 0.10.0
libtpu: 0.0.40
codegen_flags: <defaults>
</compile_context>

<pallas_src>
import jax
import jax.numpy as jnp
from jax.experimental import pallas as pl
from jax.experimental.pallas import tpu as pltpu

LANE = 128
OUT_DIM = 4   # box coordinates
OUT_PAD = 8   # stored output lanes (full-dim block; 16x less writeback than 128)


def _round_up(v, m):
    return ((v + m - 1) // m) * m


def _device_kind():
    try:
        return jax.devices()[0].device_kind.lower()
    except Exception:
        return ""


def _num_tensorcores_per_chip():
    kind = _device_kind()
    return 2 if ("v7" in kind or "7x" in kind) else 1


def _vmem_capacity_bytes():
    try:
        return int(pltpu.get_tpu_info().vmem_capacity_bytes)
    except Exception:
        # Conservative fallback: 64 MiB on v7x, 128 MiB on v5e/v6e.
        return (64 << 20) if _num_tensorcores_per_chip() == 2 else (128 << 20)


def _box_branch_kernel(x_ref, w1_ref, b1_ref, w2_ref, b2_ref, w3_ref, b3_ref,
                       o_ref):
    # MXU is bf16-native on v5e/v6e/v7x: feed bf16 operands, accumulate f32,
    # keep bias add / ReLU / sigmoid in f32.
    x = x_ref[...].astype(jnp.bfloat16)
    # Layer 1: Linear(C -> Cp) + ReLU
    h = jnp.dot(x, w1_ref[...], preferred_element_type=jnp.float32) + b1_ref[...]
    h = jnp.maximum(h, 0.0)
    # Layer 2: Linear(Cp -> Cp) + ReLU
    h = jnp.dot(h.astype(jnp.bfloat16), w2_ref[...],
                preferred_element_type=jnp.float32) + b2_ref[...]
    h = jnp.maximum(h, 0.0)
    # Layer 3: Linear(Cp -> 4, padded to 8 lanes), then sigmoid
    h = jnp.dot(h.astype(jnp.bfloat16), w3_ref[...],
                preferred_element_type=jnp.float32) + b3_ref[...]
    o_ref[...] = jax.nn.sigmoid(h).astype(o_ref.dtype)


def prepare_params(params):
    """Pad + cast the MLP parameters ONCE (hoisted out of the per-call path).

    Weights -> bf16 (MXU-native); biases stay f32 (added after f32 accumulation).
    Zero-padding is semantics-preserving: padded lanes contribute 0 and padded
    hidden channels are relu(0) = 0.
    """
    w1, b1, w2, b2, w3, b3 = params
    C = w1.shape[0]
    Cp = _round_up(max(C, LANE), LANE)

    def pad2(a, r, c, dt):
        return jnp.pad(a, ((0, r - a.shape[0]), (0, c - a.shape[1]))).astype(dt)

    w1p = pad2(w1, C, Cp, jnp.bfloat16)        # contraction dim stays C (x unpadded)
    b1p = pad2(b1, 1, Cp, jnp.float32)
    w2p = pad2(w2, Cp, Cp, jnp.bfloat16)
    b2p = pad2(b2, 1, Cp, jnp.float32)
    w3p = pad2(w3, Cp, OUT_PAD, jnp.bfloat16)
    b3p = pad2(b3, 1, OUT_PAD, jnp.float32)
    return (w1p, b1p, w2p, b2p, w3p, b3p), C, Cp


def box_branch_forward(x, prepared, *, tm=1024):
    """x: (B, S, C) float32. Returns (B, S, 4) = sigmoid(MLP(x))."""
    (w1p, b1p, w2p, b2p, w3p, b3p), C, Cp = prepared
    B, S, Cx = x.shape
    assert Cx == C, (Cx, C)
    M = B * S

    ntc = _num_tensorcores_per_chip()

    # Row tile: large to amortize per-step grid overhead, shrunk for small M.
    tm_eff = max(8, min(_round_up(tm, 8), _round_up(M, 8)))
    if ntc >= 2 and M > 8:
        # v7x: 2 TensorCores share the ("parallel",) grid axis; make the step
        # count even so both cores get balanced halves.
        steps = pl.cdiv(M, tm_eff)
        if steps % 2 == 1:
            tm_eff = max(8, _round_up(pl.cdiv(M, steps + 1), 8))
    steps = pl.cdiv(M, tm_eff)

    # No M- or C-direction padding of x: its block's last dims equal the full
    # array dims (always legal), so there is no extra HBM copy of x per call.
    x2 = x.reshape(M, C)

    # VMEM request: resident weights (x2 slack in case of double-buffer fallback),
    # double-buffered streamed x/out tiles, f32 intermediates, headroom; capped
    # at ~80% of the chip's physical VMEM (v7x: 64 MiB, v5e/v6e: 128 MiB).
    weight_bytes = (C * Cp + Cp * Cp + Cp * OUT_PAD) * 2 + (2 * Cp + OUT_PAD) * 4
    stream_bytes = 2 * (tm_eff * C * 4 + tm_eff * OUT_PAD * 4)
    interm_bytes = 2 * tm_eff * Cp * 4
    vmem_budget = 2 * weight_bytes + stream_bytes + interm_bytes + (8 << 20)
    vmem_budget = int(min(max(vmem_budget, 32 << 20),
                          int(0.8 * _vmem_capacity_bytes())))

    def call(single_buffer_weights):
        if single_buffer_weights:
            def resident(shape):
                return pl.BlockSpec(shape, lambda i: (0,) * len(shape),
                                    pipeline_mode=pl.Buffered(1))
        else:
            def resident(shape):
                return pl.BlockSpec(shape, lambda i: (0,) * len(shape))

        return pl.pallas_call(
            _box_branch_kernel,
            out_shape=jax.ShapeDtypeStruct((M, OUT_PAD), x.dtype),
            grid_spec=pltpu.PrefetchScalarGridSpec(
                num_scalar_prefetch=0,
                grid=(steps,),
                in_specs=[
                    pl.BlockSpec((tm_eff, C), lambda i: (i, 0)),      # x row tile
                    resident((C, Cp)), resident((1, Cp)),             # layer 1 W, b
                    resident((Cp, Cp)), resident((1, Cp)),            # layer 2 W, b
                    resident((Cp, OUT_PAD)), resident((1, OUT_PAD)),  # layer 3 W, b
                ],
                out_specs=pl.BlockSpec((tm_eff, OUT_PAD), lambda i: (i, 0)),
            ),
            compiler_params=pltpu.CompilerParams(
                dimension_semantics=("parallel",),
                vmem_limit_bytes=vmem_budget),
        )(x2, w1p, b1p, w2p, b2p, w3p, b3p)

    try:
        out = call(single_buffer_weights=True)
    except Exception:
        # Fallback: default double-buffered weight blocks (known-good path).
        out = call(single_buffer_weights=False)

    # Padded output lanes are sliced off in the wrapper, not in the kernel.
    return out[:, :OUT_DIM].reshape(B, S, OUT_DIM)


def init_box_branch_params(key, input_channels):
    """Deterministic parameter init matching nn.Linear shapes of
    MLP(input_channels, input_channels, 4, 3)."""
    C = input_channels
    keys = jax.random.split(key, 6)
    scale = 0.1
    # Weights stored as (in, out) so the kernel does x @ W (= PyTorch x @ W.T).
    w1 = scale * jax.random.normal(keys[0], (C, C), jnp.float32)
    b1 = scale * jax.random.normal(keys[1], (1, C), jnp.float32)
    w2 = scale * jax.random.normal(keys[2], (C, C), jnp.float32)
    b2 = scale * jax.random.normal(keys[3], (1, C), jnp.float32)
    w3 = scale * jax.random.normal(keys[4], (C, 4), jnp.float32)
    b3 = scale * jax.random.normal(keys[5], (1, 4), jnp.float32)
    return (w1, b1, w2, b2, w3, b3)


def box_branch_reference(x, params):
    """Pure-JAX f32 reference of the PyTorch forward, for a sanity check."""
    w1, b1, w2, b2, w3, b3 = params
    h = jnp.maximum(x @ w1 + b1, 0.0)
    h = jnp.maximum(h @ w2 + b2, 0.0)
    h = h @ w3 + b3
    return jax.nn.sigmoid(h)


if __name__ == "__main__":
    key = jax.random.PRNGKey(0)
    k_x, k_p = jax.random.split(key)

    B, S, C = 2, 8, 32          # batch, seq (num queries), hidden channels
    x = jax.random.normal(k_x, (B, S, C), jnp.float32)
    params = init_box_branch_params(k_p, C)
    prepared = prepare_params(params)   # pad + bf16-cast once, outside the call

    out = box_branch_forward(x, prepared)
    out = jax.block_until_ready(out)

    ref = box_branch_reference(x, params)
    assert out.shape == (B, S, 4), out.shape
    # bf16 MXU operands + f32 accumulation vs pure-f32 reference.
    assert jnp.allclose(out, ref, atol=1e-2, rtol=1e-2), \
        float(jnp.max(jnp.abs(out - ref)))

    print("KERNEL_OK")
</pallas_src>

<mosaic_0001>
module attributes {stable_mosaic.version = 11 : i64} {
  func.func @_box_branch_kernel(%arg0: i32, %arg1: memref<16x32xf32, #tpu.memory_space<vmem>>, %arg2: memref<32x128xbf16, #tpu.memory_space<vmem>>, %arg3: memref<1x128xf32, #tpu.memory_space<vmem>>, %arg4: memref<128x128xbf16, #tpu.memory_space<vmem>>, %arg5: memref<1x128xf32, #tpu.memory_space<vmem>>, %arg6: memref<128x8xbf16, #tpu.memory_space<vmem>>, %arg7: memref<1x8xf32, #tpu.memory_space<vmem>>, %arg8: memref<16x8xf32, #tpu.memory_space<vmem>>) attributes {dimension_semantics = [#tpu.dimension_semantics<parallel>], iteration_bounds = array<i64: 1>, scalar_prefetch = 0 : i64, scratch_operands = 0 : i64, tpu.core_type = #tpu.core_type<tc>, window_params = [{transform_indices = @transform_0, window_bounds = array<i64: 16, 32>}, {pipeline_mode = #tpu.pipeline_mode<synchronous>, transform_indices = @transform_1, window_bounds = array<i64: 32, 128>}, {pipeline_mode = #tpu.pipeline_mode<synchronous>, transform_indices = @transform_2, window_bounds = array<i64: 1, 128>}, {pipeline_mode = #tpu.pipeline_mode<synchronous>, transform_indices = @transform_3, window_bounds = array<i64: 128, 128>}, {pipeline_mode = #tpu.pipeline_mode<synchronous>, transform_indices = @transform_4, window_bounds = array<i64: 1, 128>}, {pipeline_mode = #tpu.pipeline_mode<synchronous>, transform_indices = @transform_5, window_bounds = array<i64: 128, 8>}, {pipeline_mode = #tpu.pipeline_mode<synchronous>, transform_indices = @transform_6, window_bounds = array<i64: 1, 8>}, {transform_indices = @transform_7, window_bounds = array<i64: 16, 8>}]} {
    %c0 = arith.constant 0 : index
    %c0_0 = arith.constant 0 : index
    %0 = vector.load %arg1[%c0, %c0_0] : memref<16x32xf32, #tpu.memory_space<vmem>>, vector<16x32xf32>
    %1 = arith.truncf %0 : vector<16x32xf32> to vector<16x32xbf16>
    %c0_1 = arith.constant 0 : index
    %c0_2 = arith.constant 0 : index
    %2 = vector.load %arg2[%c0_1, %c0_2] : memref<32x128xbf16, #tpu.memory_space<vmem>>, vector<32x128xbf16>
    %cst = arith.constant dense<0.000000e+00> : vector<16x128xf32>
    %3 = tpu.matmul %1, %2, %cst {dimension_numbers = #tpu.dot_dimension_numbers<[1], [0], [0], [1], [0, 0, 1, 1], [], []>} : vector<16x32xbf16>, vector<32x128xbf16>, vector<16x128xf32> -> vector<16x128xf32>
    %c0_3 = arith.constant 0 : index
    %c0_4 = arith.constant 0 : index
    %4 = vector.load %arg3[%c0_3, %c0_4] : memref<1x128xf32, #tpu.memory_space<vmem>>, vector<1x128xf32>
    %5 = vector.broadcast %4 : vector<1x128xf32> to vector<16x128xf32>
    %6 = arith.addf %3, %5 : vector<16x128xf32>
    %cst_5 = arith.constant 0.000000e+00 : f32
    %7 = vector.broadcast %cst_5 : f32 to vector<16x128xf32>
    %8 = arith.maximumf %6, %7 : vector<16x128xf32>
    %9 = arith.truncf %8 : vector<16x128xf32> to vector<16x128xbf16>
    %c0_6 = arith.constant 0 : index
    %c0_7 = arith.constant 0 : index
    %10 = vector.load %arg4[%c0_6, %c0_7] : memref<128x128xbf16, #tpu.memory_space<vmem>>, vector<128x128xbf16>
    %cst_8 = arith.constant dense<0.000000e+00> : vector<16x128xf32>
    %11 = tpu.matmul %9, %10, %cst_8 {dimension_numbers = #tpu.dot_dimension_numbers<[1], [0], [0], [1], [0, 0, 1, 1], [], []>} : vector<16x128xbf16>, vector<128x128xbf16>, vector<16x128xf32> -> vector<16x128xf32>
    %c0_9 = arith.constant 0 : index
    %c0_10 = arith.constant 0 : index
    %12 = vector.load %arg5[%c0_9, %c0_10] : memref<1x128xf32, #tpu.memory_space<vmem>>, vector<1x128xf32>
    %13 = vector.broadcast %12 : vector<1x128xf32> to vector<16x128xf32>
    %14 = arith.addf %11, %13 : vector<16x128xf32>
    %cst_11 = arith.constant 0.000000e+00 : f32
    %15 = vector.broadcast %cst_11 : f32 to vector<16x128xf32>
    %16 = arith.maximumf %14, %15 : vector<16x128xf32>
    %17 = arith.truncf %16 : vector<16x128xf32> to vector<16x128xbf16>
    %c0_12 = arith.constant 0 : index
    %c0_13 = arith.constant 0 : index
    %18 = vector.load %arg6[%c0_12, %c0_13] : memref<128x8xbf16, #tpu.memory_space<vmem>>, vector<128x8xbf16>
    %cst_14 = arith.constant dense<0.000000e+00> : vector<16x8xf32>
    %19 = tpu.matmul %17, %18, %cst_14 {dimension_numbers = #tpu.dot_dimension_numbers<[1], [0], [0], [1], [0, 0, 1, 1], [], []>} : vector<16x128xbf16>, vector<128x8xbf16>, vector<16x8xf32> -> vector<16x8xf32>
    %c0_15 = arith.constant 0 : index
    %c0_16 = arith.constant 0 : index
    %20 = vector.load %arg7[%c0_15, %c0_16] : memref<1x8xf32, #tpu.memory_space<vmem>>, vector<1x8xf32>
    %21 = vector.broadcast %20 : vector<1x8xf32> to vector<16x8xf32>
    %22 = arith.addf %19, %21 : vector<16x8xf32>
    %23 = arith.negf %22 : vector<16x8xf32>
    %24 = math.exp %23 : vector<16x8xf32>
    %cst_17 = arith.constant 1.000000e+00 : f32
    %25 = vector.broadcast %cst_17 : f32 to vector<16x8xf32>
    %26 = arith.addf %25, %24 : vector<16x8xf32>
    %27 = arith.divf %25, %26 : vector<16x8xf32>
    %c0_18 = arith.constant 0 : index
    %c0_19 = arith.constant 0 : index
    %28 = vector.load %arg8[%c0_18, %c0_19] : memref<16x8xf32, #tpu.memory_space<vmem>>, vector<16x8xf32>
    tpu.vector_store %arg8[%c0_18, %c0_19], %27 {strides = array<i32>} : memref<16x8xf32, #tpu.memory_space<vmem>>, vector<16x8xf32>,
    return
  }
  func.func @transform_0(%arg0: i32) -> (i32, i32) {
    %c0_i32 = arith.constant 0 : i32
    %c0_i32_0 = arith.constant 0 : i32
    return %arg0, %c0_i32 : i32, i32
  }
  func.func @transform_1(%arg0: i32) -> (i32, i32) {
    %c0_i32 = arith.constant 0 : i32
    %c0_i32_0 = arith.constant 0 : i32
    %c0_i32_1 = arith.constant 0 : i32
    return %c0_i32, %c0_i32_0 : i32, i32
  }
  func.func @transform_2(%arg0: i32) -> (i32, i32) {
    %c0_i32 = arith.constant 0 : i32
    %c0_i32_0 = arith.constant 0 : i32
    %c0_i32_1 = arith.constant 0 : i32
    return %c0_i32, %c0_i32_0 : i32, i32
  }
  func.func @transform_3(%arg0: i32) -> (i32, i32) {
    %c0_i32 = arith.constant 0 : i32
    %c0_i32_0 = arith.constant 0 : i32
    %c0_i32_1 = arith.constant 0 : i32
    return %c0_i32, %c0_i32_0 : i32, i32
  }
  func.func @transform_4(%arg0: i32) -> (i32, i32) {
    %c0_i32 = arith.constant 0 : i32
    %c0_i32_0 = arith.constant 0 : i32
    %c0_i32_1 = arith.constant 0 : i32
    return %c0_i32, %c0_i32_0 : i32, i32
  }
  func.func @transform_5(%arg0: i32) -> (i32, i32) {
    %c0_i32 = arith.constant 0 : i32
    %c0_i32_0 = arith.constant 0 : i32
    %c0_i32_1 = arith.constant 0 : i32
    return %c0_i32, %c0_i32_0 : i32, i32
  }
  func.func @transform_6(%arg0: i32) -> (i32, i32) {
    %c0_i32 = arith.constant 0 : i32
    %c0_i32_0 = arith.constant 0 : i32
    %c0_i32_1 = arith.constant 0 : i32
    return %c0_i32, %c0_i32_0 : i32, i32
  }
  func.func @transform_7(%arg0: i32) -> (i32, i32) {
    %c0_i32 = arith.constant 0 : i32
    %c0_i32_0 = arith.constant 0 : i32
    return %arg0, %c0_i32 : i32, i32
  }
}

module attributes {stable_mosaic.version = 11 : i64} {
  func.func @_box_branch_kernel(%arg0: i32, %arg1: memref<16x32xf32, #tpu.memory_space<vmem>>, %arg2: memref<32x128xbf16, #tpu.memory_space<vmem>>, %arg3: memref<1x128xf32, #tpu.memory_space<vmem>>, %arg4: memref<128x128xbf16, #tpu.memory_space<vmem>>, %arg5: memref<1x128xf32, #tpu.memory_space<vmem>>, %arg6: memref<128x8xbf16, #tpu.memory_space<vmem>>, %arg7: memref<1x8xf32, #tpu.memory_space<vmem>>, %arg8: memref<16x8xf32, #tpu.memory_space<vmem>>) attributes {dimension_semantics = [#tpu.dimension_semantics<parallel>], iteration_bounds = array<i64: 1>, scalar_prefetch = 0 : i64, scratch_operands = 0 : i64, tpu.core_type = #tpu.core_type<tc>, window_params = [{transform_indices = @transform_0, window_bounds = array<i64: 16, 32>}, {pipeline_mode = #tpu.pipeline_mode<synchronous>, transform_indices = @transform_1, window_bounds = array<i64: 32, 128>}, {pipeline_mode = #tpu.pipeline_mode<synchronous>, transform_indices = @transform_2, window_bounds = array<i64: 1, 128>}, {pipeline_mode = #tpu.pipeline_mode<synchronous>, transform_indices = @transform_3, window_bounds = array<i64: 128, 128>}, {pipeline_mode = #tpu.pipeline_mode<synchronous>, transform_indices = @transform_4, window_bounds = array<i64: 1, 128>}, {pipeline_mode = #tpu.pipeline_mode<synchronous>, transform_indices = @transform_5, window_bounds = array<i64: 128, 8>}, {pipeline_mode = #tpu.pipeline_mode<synchronous>, transform_indices = @transform_6, window_bounds = array<i64: 1, 8>}, {transform_indices = @transform_7, window_bounds = array<i64: 16, 8>}]} {
    %c0 = arith.constant 0 : index
    %c0_0 = arith.constant 0 : index
    %0 = vector.load %arg1[%c0, %c0_0] : memref<16x32xf32, #tpu.memory_space<vmem>>, vector<16x32xf32>
    %1 = arith.truncf %0 : vector<16x32xf32> to vector<16x32xbf16>
    %c0_1 = arith.constant 0 : index
    %c0_2 = arith.constant 0 : index
    %2 = vector.load %arg2[%c0_1, %c0_2] : memref<32x128xbf16, #tpu.memory_space<vmem>>, vector<32x128xbf16>
    %cst = arith.constant dense<0.000000e+00> : vector<16x128xf32>
    %3 = tpu.matmul %1, %2, %cst {dimension_numbers = #tpu.dot_dimension_numbers<[1], [0], [0], [1], [0, 0, 1, 1], [], []>} : vector<16x32xbf16>, vector<32x128xbf16>, vector<16x128xf32> -> vector<16x128xf32>
    %c0_3 = arith.constant 0 : index
    %c0_4 = arith.constant 0 : index
    %4 = vector.load %arg3[%c0_3, %c0_4] : memref<1x128xf32, #tpu.memory_space<vmem>>, vector<1x128xf32>
    %5 = vector.broadcast %4 : vector<1x128xf32> to vector<16x128xf32>
    %6 = arith.addf %3, %5 : vector<16x128xf32>
    %cst_5 = arith.constant 0.000000e+00 : f32
    %7 = vector.broadcast %cst_5 : f32 to vector<16x128xf32>
    %8 = arith.maximumf %6, %7 : vector<16x128xf32>
    %9 = arith.truncf %8 : vector<16x128xf32> to vector<16x128xbf16>
    %c0_6 = arith.constant 0 : index
    %c0_7 = arith.constant 0 : index
    %10 = vector.load %arg4[%c0_6, %c0_7] : memref<128x128xbf16, #tpu.memory_space<vmem>>, vector<128x128xbf16>
    %cst_8 = arith.constant dense<0.000000e+00> : vector<16x128xf32>
    %11 = tpu.matmul %9, %10, %cst_8 {dimension_numbers = #tpu.dot_dimension_numbers<[1], [0], [0], [1], [0, 0, 1, 1], [], []>} : vector<16x128xbf16>, vector<128x128xbf16>, vector<16x128xf32> -> vector<16x128xf32>
    %c0_9 = arith.constant 0 : index
    %c0_10 = arith.constant 0 : index
    %12 = vector.load %arg5[%c0_9, %c0_10] : memref<1x128xf32, #tpu.memory_space<vmem>>, vector<1x128xf32>
    %13 = vector.broadcast %12 : vector<1x128xf32> to vector<16x128xf32>
    %14 = arith.addf %11, %13 : vector<16x128xf32>
    %cst_11 = arith.constant 0.000000e+00 : f32
    %15 = vector.broadcast %cst_11 : f32 to vector<16x128xf32>
    %16 = arith.maximumf %14, %15 : vector<16x128xf32>
    %17 = arith.truncf %16 : vector<16x128xf32> to vector<16x128xbf16>
    %c0_12 = arith.constant 0 : index
    %c0_13 = arith.constant 0 : index
    %18 = vector.load %arg6[%c0_12, %c0_13] : memref<128x8xbf16, #tpu.memory_space<vmem>>, vector<128x8xbf16>
    %cst_14 = arith.constant dense<0.000000e+00> : vector<16x8xf32>
    %19 = tpu.matmul %17, %18, %cst_14 {dimension_numbers = #tpu.dot_dimension_numbers<[1], [0], [0], [1], [0, 0, 1, 1], [], []>} : vector<16x128xbf16>, vector<128x8xbf16>, vector<16x8xf32> -> vector<16x8xf32>
    %c0_15 = arith.constant 0 : index
    %c0_16 = arith.constant 0 : index
    %20 = vector.load %arg7[%c0_15, %c0_16] : memref<1x8xf32, #tpu.memory_space<vmem>>, vector<1x8xf32>
    %21 = vector.broadcast %20 : vector<1x8xf32> to vector<16x8xf32>
    %22 = arith.addf %19, %21 : vector<16x8xf32>
    %23 = arith.negf %22 : vector<16x8xf32>
    %24 = math.exp %23 : vector<16x8xf32>
    %cst_17 = arith.constant 1.000000e+00 : f32
    %25 = vector.broadcast %cst_17 : f32 to vector<16x8xf32>
    %26 = arith.addf %25, %24 : vector<16x8xf32>
    %27 = arith.divf %25, %26 : vector<16x8xf32>
    %c0_18 = arith.constant 0 : index
    %c0_19 = arith.constant 0 : index
    %28 = vector.load %arg8[%c0_18, %c0_19] : memref<16x8xf32, #tpu.memory_space<vmem>>, vector<16x8xf32>
    tpu.vector_store %arg8[%c0_18, %c0_19], %27 {strides = array<i32>} : memref<16x8xf32, #tpu.memory_space<vmem>>, vector<16x8xf32>,
    return
  }
  func.func @transform_0(%arg0: i32) -> (i32, i32) {
    %c0_i32 = arith.constant 0 : i32
    %c0_i32_0 = arith.constant 0 : i32
    return %arg0, %c0_i32 : i32, i32
  }
  func.func @transform_1(%arg0: i32) -> (i32, i32) {
    %c0_i32 = arith.constant 0 : i32
    %c0_i32_0 = arith.constant 0 : i32
    %c0_i32_1 = arith.constant 0 : i32
    return %c0_i32, %c0_i32_0 : i32, i32
  }
  func.func @transform_2(%arg0: i32) -> (i32, i32) {
    %c0_i32 = arith.constant 0 : i32
    %c0_i32_0 = arith.constant 0 : i32
    %c0_i32_1 = arith.constant 0 : i32
    return %c0_i32, %c0_i32_0 : i32, i32
  }
  func.func @transform_3(%arg0: i32) -> (i32, i32) {
    %c0_i32 = arith.constant 0 : i32
    %c0_i32_0 = arith.constant 0 : i32
    %c0_i32_1 = arith.constant 0 : i32
    return %c0_i32, %c0_i32_0 : i32, i32
  }
  func.func @transform_4(%arg0: i32) -> (i32, i32) {
    %c0_i32 = arith.constant 0 : i32
    %c0_i32_0 = arith.constant 0 : i32
    %c0_i32_1 = arith.constant 0 : i32
    return %c0_i32, %c0_i32_0 : i32, i32
  }
  func.func @transform_5(%arg0: i32) -> (i32, i32) {
    %c0_i32 = arith.constant 0 : i32
    %c0_i32_0 = arith.constant 0 : i32
    %c0_i32_1 = arith.constant 0 : i32
    return %c0_i32, %c0_i32_0 : i32, i32
  }
  func.func @transform_6(%arg0: i32) -> (i32, i32) {
    %c0_i32 = arith.constant 0 : i32
    %c0_i32_0 = arith.constant 0 : i32
    %c0_i32_1 = arith.constant 0 : i32
    return %c0_i32, %c0_i32_0 : i32, i32
  }
  func.func @transform_7(%arg0: i32) -> (i32, i32) {
    %c0_i32 = arith.constant 0 : i32
    %c0_i32_0 = arith.constant 0 : i32
    return %arg0, %c0_i32 : i32, i32
  }
}

</mosaic_0001>

<bundles_post_ra>
// kernel: tpu_custom_call.1
= control target key start
LH: loop header
LB: loop body
LE: loop exit
PB: predicated region body
PF: predicated region fallthrough
CT: control target
= control target key end

     0   :  { %12 = vsyncpa [#allocation3], 0  ;;  %s711_s0 = inlined_call_operand.hbm [shape: f32[16,32], index: 0, kind: input, shape index: {}]   ;;  %s712_s1 = inlined_call_operand.hbm [shape: bf16[32,128], index: 1, kind: input, shape index: {}]   ;;  %s713_s2 = inlined_call_operand.vmem [shape: f32[1,128], index: 2, kind: input, shape index: {}]   ;;  %s714_s3 = inlined_call_operand.vmem [shape: bf16[128,128], index: 3, kind: input, shape index: {}]   ;;  %s715_s4 = inlined_call_operand.vmem [shape: f32[1,128], index: 4, kind: input, shape index: {}]   ;;  %s716_s5 = inlined_call_operand.vmem [shape: bf16[128,8], index: 5, kind: input, shape index: {}]   ;;  %s717_s6 = inlined_call_operand.vmem [shape: f32[1,8], index: 6, kind: input, shape index: {}]   ;;  %s718_s7 = inlined_call_operand.vmem [shape: f32[16,8], index: 7, kind: output, shape index: {}]  }
   0x1   :  { %13 = vsyncpa [#allocation5], 0  ;;  %s552_s24 = smov [#allocation2]   ;;  %s504_s28 = scalar_lea.hbm %s711_s0, 256 }
   0x2   :  { %s19_s25 = sshll.u32 %s552_s24, 4  ;;  %p505_p0 = scmp.ne.s32.totalorder %s711_s0, %s504_s28  ;;  %s20_s25 = int_to_ptr.vmem [resolvable:$true] %s19_s25 }
   0x3   :  { %p508_p1 = scmp.lt.u32.totalorder %s504_s28, %s711_s0 }
   0x5   :  { %p510_p2 = pnand %p508_p1, %p505_p0 }
   0x7   :  { %513 = shalt.err (!%p510_p2)
}
   0x8   :  { %s514_s10 = scalar_lea.vmem %s20_s25, 256  ;;  %p519_p4 = scmp.lt.s32.totalorder %s20_s25, %s20_s25 }
   0x9   :  { %p515_p3 = scmp.ne.s32.totalorder %s20_s25, %s514_s10  ;;  %p520_p5 = scmp.lt.s32.totalorder %s514_s10, %s514_s10 }
   0xb   :  { %p521_p6 = por %p520_p5, %p519_p4 }
   0xd   :  { %p522_p7 = pnand %p521_p6, %p515_p3 }
   0xf   :  { %525 = shalt.err (!%p522_p7)
}
  0x10   :  { %s553_s11 = smov 128   ;;  %s554_s12 = smov 8  }
  0x11   :  { %25 = dma.hbm_to_vmem [thread:$0]  %s711_s0, 256, %s20_s25, [#allocation3], %s553_s11, %s553_s11, %s554_s12  }
  0x12   :  { %s555_s15 = smov [#allocation4]   ;;  %s526_s19 = scalar_lea.hbm %s712_s1, 256 }
  0x13   :  { %s31_s16 = sshll.u32 %s555_s15, 4  ;;  %p527_p8 = scmp.ne.s32.totalorder %s712_s1, %s526_s19  ;;  %s32_s16 = int_to_ptr.vmem [resolvable:$true] %s31_s16 }
  0x14   :  { %p530_p9 = scmp.lt.u32.totalorder %s526_s19, %s712_s1 }
  0x16   :  { %p532_p10 = pnand %p530_p9, %p527_p8 }
  0x18   :  { %535 = shalt.err (!%p532_p10)
}
  0x19   :  { %s536_s24 = scalar_lea.vmem %s32_s16, 256  ;;  %p541_p12 = scmp.lt.s32.totalorder %s32_s16, %s32_s16 }
  0x1a   :  { %p537_p11 = scmp.ne.s32.totalorder %s32_s16, %s536_s24  ;;  %p542_p13 = scmp.lt.s32.totalorder %s536_s24, %s536_s24 }
  0x1c   :  { %p543_p0 = por %p542_p13, %p541_p12 }
  0x1e   :  { %p544_p1 = pnand %p543_p0, %p537_p11 }
  0x20   :  { %547 = shalt.err (!%p544_p1)
}
  0x21   :  { %s556_s0 = smov 64   ;;  %s557_s25 = smov 4  }
  0x22   :  { %37 = dma.hbm_to_vmem [thread:$0]  %s712_s1, 256, %s32_s16, [#allocation5], %s556_s0, %s556_s0, %s557_s25  }
  0x23   :  { %548 = dma.done.wait [#allocation3], 256  }
  0x24   :  { %549 = vsyncadd [#allocation3], 4294967040 }
  0x25   :  { %550 = dma.done.wait [#allocation5], 256  }
  0x26   :  { %551 = vsyncadd [#allocation5], 4294967040  ;;  %v558_v0 = vmov 0.0   ;;  %vm559_vm0 = vmmov 0   ;;  %v478_v1 = vld [vmem:[#allocation4] sm:$0xff]   ;;  %v479_v2 = vld [vmem:[#allocation4 + $0x8] sm:$0xff]  }
  0x27   :  { %422 = vmatprep.subr.bf16.mxu0 %v558_v0  ;;  %426 = vmatprep.mubr.msk.bf16.mxu0 %vm559_vm0, %v558_v0  ;;  %v55_v3 = vld [vmem:[#allocation2] sm:$0xff]  ;;  %v56_v4 = vld [vmem:[#allocation2 + $0x8] sm:$0xff]  ;;  %vm81_vm1 = vcmask 261120   ;;  %v482_v8 = vld [vmem:[%s714_s3 + $0x10] sm:$0xff]   ;;  %vm368_vm2 = vcmask 64512  }
  0x28   :  { %430 = vmatprep.subr.bf16.mxu1 %v558_v0  ;;  %446 = vmatprep.mubr.msk.bf16.mxu1 %vm559_vm0, %v558_v0  ;;  %v480_v5 = vld [vmem:[%s714_s3] sm:$0xff]   ;;  %v57_v6 = vpack.c.bf16 %v56_v4, %v55_v3  ;;  %v481_v7 = vld [vmem:[%s714_s3 + $0x8] sm:$0xff]   ;;  %v483_v9 = vld [vmem:[%s714_s3 + $0x18] sm:$0xff]  }
  0x29   :  { %423 = vmatpush3.bf16.msra.mxu0 %v478_v1  ;;  %431 = vmatpush3.bf16.msra.mxu1 %v480_v5  ;;  %v484_v10 = vld [vmem:[%s714_s3 + $0x20] sm:$0xff]   ;;  %v485_v11 = vld [vmem:[%s714_s3 + $0x28] sm:$0xff]   ;;  %v486_v12 = vld [vmem:[%s714_s3 + $0x30] sm:$0xff]  }
  0x2a   :  { %424 = vmatprep.subr.bf16.mxu0 %v558_v0  ;;  %432 = vmatprep.subr.bf16.mxu1 %v558_v0  ;;  %v487_v13 = vld [vmem:[%s714_s3 + $0x38] sm:$0xff]   ;;  %v488_v14 = vld [vmem:[%s716_s5] sm:$0xff]   ;;  %v489_v15 = vld [vmem:[%s716_s5 + $0x8] sm:$0xff]  }
  0x2b   :  { %v490_v16 = vld [vmem:[%s716_s5 + $0x10] sm:$0xff]   ;;  %v491_v17 = vld [vmem:[%s716_s5 + $0x18] sm:$0xff]   ;;  %v492_v18 = vld [vmem:[%s716_s5 + $0x20] sm:$0xff]  }
  0x2c   :  { %v493_v19 = vld [vmem:[%s716_s5 + $0x28] sm:$0xff]   ;;  %v377_v20 = vld [vmem:[%s713_s2] ss:$0 sm:$0xff]  ;;  %v494_v30 = vld [vmem:[%s716_s5 + $0x30] sm:$0xff]  }
  0x2d   :  { %425 = vmatpush3.bf16.msra.mxu0 %v479_v2  ;;  %433 = vmatpush3.bf16.msra.mxu1 %v481_v7  ;;  %v495_v31 = vld [vmem:[%s716_s5 + $0x38] sm:$0xff]   ;;  %v381_v32 = vld [vmem:[%s715_s4] ss:$0 sm:$0xff] }
  0x2e   :  { %450 = vmatprep.subr.bf16.mxu0 %v558_v0  ;;  %434 = vmatprep.subr.bf16.mxu1 %v558_v0  ;;  %v390_v42 = vld [vmem:[%s717_s6] ss:$0 sm:$0xff] }
  0x30   :  { %427 = vmatmul.mubr.msk.bf16.vlgmr.msra.gmra.mrb[0].mxu0 %vm81_vm1, %v57_v6 }
  0x31   :  { %466 = vmatprep.mubr.msk.bf16.mxu0 %vm559_vm0, %v558_v0  ;;  %435 = vmatpush3.bf16.msra.mxu1 %v482_v8 }
  0x32   :  { %436 = vmatprep.subr.bf16.mxu1 %v558_v0  ;;  %451 = vmatpush3.bf16.msra.mxu0 %v488_v14 }
  0x33   :  { %452 = vmatprep.subr.bf16.mxu0 %v558_v0 }
  0x35   :  { %437 = vmatpush3.bf16.msra.mxu1 %v483_v9 }
  0x36   :  { %438 = vmatprep.subr.bf16.mxu1 %v558_v0  ;;  %453 = vmatpush3.bf16.msra.mxu0 %v489_v15 }
  0x37   :  { %454 = vmatprep.subr.bf16.mxu0 %v558_v0 }
  0x39   :  { %439 = vmatpush3.bf16.msra.mxu1 %v484_v10 }
  0x3a   :  { %440 = vmatprep.subr.bf16.mxu1 %v558_v0  ;;  %455 = vmatpush3.bf16.msra.mxu0 %v490_v16 }
  0x3b   :  { %456 = vmatprep.subr.bf16.mxu0 %v558_v0 }
  0x3d   :  { %441 = vmatpush3.bf16.msra.mxu1 %v485_v11 }
  0x3e   :  { %442 = vmatprep.subr.bf16.mxu1 %v558_v0  ;;  %457 = vmatpush3.bf16.msra.mxu0 %v491_v17 }
  0x3f   :  { %458 = vmatprep.subr.bf16.mxu0 %v558_v0 }
  0x41   :  { %443 = vmatpush3.bf16.msra.mxu1 %v486_v12 }
  0x42   :  { %444 = vmatprep.subr.bf16.mxu1 %v558_v0  ;;  %459 = vmatpush3.bf16.msra.mxu0 %v492_v18 }
  0x43   :  { %460 = vmatprep.subr.bf16.mxu0 %v558_v0 }
  0x45   :  { %445 = vmatpush3.bf16.msra.mxu1 %v487_v13 }
  0x46   :  { %461 = vmatpush3.bf16.msra.mxu0 %v493_v19 }
  0x47   :  { %462 = vmatprep.subr.bf16.mxu0 %v558_v0 }
  0x4a   :  { %463 = vmatpush3.bf16.msra.mxu0 %v494_v30 }
  0x4b   :  { %464 = vmatprep.subr.bf16.mxu0 %v558_v0 }
  0x4e   :  { %465 = vmatpush3.bf16.msra.mxu0 %v495_v31 }
 0x103   :  { %v119_v21 = vpop.f32.mrb[0].mxu0 }
 0x104   :  { %v120_v22 = vadd.f32 %v377_v20, %v119_v21  ;;  %v428_v23 = vpop.f32.mrb[1].mxu0 }
 0x105   :  { %v122_v24 = vpop.f32.mrb[2].mxu0 }
 0x106   :  { %v123_v25 = vadd.f32 %v377_v20, %v122_v24  ;;  %v429_v26 = vpop.f32.mrb[3].mxu0  ;;  %v126_v27 = vmax.f32 %v120_v22, 0.0 }
 0x108   :  { %v127_v28 = vmax.f32 %v123_v25, 0.0 }
 0x10a   :  { %v128_v29 = vpack.c.bf16 %v127_v28, %v126_v27 }
 0x10c   :  { %447 = vmatmul.mubr.bf16.vlgmr.msra.gmra.mrb[0].mxu1 %v128_v29 }
 0x1df   :  { %v234_v33 = vpop.f32.mrb[0].mxu1 }
 0x1e0   :  { %v235_v34 = vadd.f32 %v381_v32, %v234_v33  ;;  %v448_v35 = vpop.f32.mrb[1].mxu1 }
 0x1e1   :  { %v237_v36 = vpop.f32.mrb[2].mxu1 }
 0x1e2   :  { %v238_v37 = vadd.f32 %v381_v32, %v237_v36  ;;  %v449_v38 = vpop.f32.mrb[3].mxu1  ;;  %v241_v39 = vmax.f32 %v235_v34, 0.0 }
 0x1e4   :  { %v242_v40 = vmax.f32 %v238_v37, 0.0 }
 0x1e6   :  { %v243_v41 = vpack.c.bf16 %v242_v40, %v241_v39 }
 0x1e8   :  { %467 = vmatmul.mubr.bf16.vlgmr.msra.gmra.mrb[4].mxu0 %v243_v41 }
 0x2bb   :  { %v349_v43 = vpop.f32.mrb[4].mxu0 }
 0x2bc   :  { %v350_v44 = vadd.f32 %v390_v42, %v349_v43  ;;  %v468_v45 = vpop.f32.mrb[5].mxu0 }
 0x2bd   :  { %v352_v46 = vpop.f32.mrb[6].mxu0 }
 0x2be   :  { %v399_v47 = vmul.f32 -1.442695, %v350_v44  ;;  %v353_v48 = vadd.f32 %v390_v42, %v352_v46  ;;  %v469_v49 = vpop.f32.mrb[7].mxu0 }
 0x2c0   :  { %496 = vpow2.f32 %v399_v47  ;;  %v400_v50 = vmul.f32 -1.442695, %v353_v48 }
 0x2c2   :  { %498 = vpow2.f32 %v400_v50 }
 0x2ca   :  { %v497_v51 = vpop.eup %496 }
 0x2cb   :  { %v362_v52 = vadd.f32 1.0, %v497_v51 }
 0x2cc   :  { %v499_v53 = vpop.eup %498 }
 0x2cd   :  { %500 = vrcp.f32 %v362_v52  ;;  %v363_v54 = vadd.f32 1.0, %v499_v53 }
 0x2cf   :  { %502 = vrcp.f32 %v363_v54 }
 0x2d7   :  { %v501_v55 = vpop.eup %500 }
 0x2d8   :  { %369 = vst.msk [vmem:[%s718_s7] sm:$0xff] %vm368_vm2, %v501_v55 }
 0x2d9   :  { %v503_v56 = vpop.eup %502 }
 0x2da   :  { %370 = vst.msk [vmem:[%s718_s7 + $0x8] sm:$0xff] %vm368_vm2, %v503_v56 }
 0x2db   :  { %375 = vsyncpa [#allocation3], 1 }
 0x2dc   :  { %376 = vsyncpa [#allocation5], 1 }

// kernel: tpu_custom_call.1
= control target key start
LH: loop header
LB: loop body
LE: loop exit
PB: predicated region body
PF: predicated region fallthrough
CT: control target
= control target key end

     0   :  { %12 = vsyncpa [#allocation3], 0  ;;  %s711_s0 = inlined_call_operand.hbm [shape: f32[16,32], index: 0, kind: input, shape index: {}]   ;;  %s712_s1 = inlined_call_operand.hbm [shape: bf16[32,128], index: 1, kind: input, shape index: {}]   ;;  %s713_s2 = inlined_call_operand.vmem [shape: f32[1,128], index: 2, kind: input, shape index: {}]   ;;  %s714_s3 = inlined_call_operand.vmem [shape: bf16[128,128], index: 3, kind: input, shape index: {}]   ;;  %s715_s4 = inlined_call_operand.vmem [shape: f32[1,128], index: 4, kind: input, shape index: {}]   ;;  %s716_s5 = inlined_call_operand.vmem [shape: bf16[128,8], index: 5, kind: input, shape index: {}]   ;;  %s717_s6 = inlined_call_operand.vmem [shape: f32[1,8], index: 6, kind: input, shape index: {}]   ;;  %s718_s7 = inlined_call_operand.vmem [shape: f32[16,8], index: 7, kind: output, shape index: {}]  }
   0x1   :  { %13 = vsyncpa [#allocation5], 0  ;;  %s552_s24 = smov [#allocation2]   ;;  %s504_s28 = scalar_lea.hbm %s711_s0, 256 }
   0x2   :  { %s19_s25 = sshll.u32 %s552_s24, 4  ;;  %p505_p0 = scmp.ne.s32.totalorder %s711_s0, %s504_s28  ;;  %s20_s25 = int_to_ptr.vmem [resolvable:$true] %s19_s25 }
   0x3   :  { %p508_p1 = scmp.lt.u32.totalorder %s504_s28, %s711_s0 }
   0x5   :  { %p510_p2 = pnand %p508_p1, %p505_p0 }
   0x7   :  { %513 = shalt.err (!%p510_p2)
}
   0x8   :  { %s514_s10 = scalar_lea.vmem %s20_s25, 256  ;;  %p519_p4 = scmp.lt.s32.totalorder %s20_s25, %s20_s25 }
   0x9   :  { %p515_p3 = scmp.ne.s32.totalorder %s20_s25, %s514_s10  ;;  %p520_p5 = scmp.lt.s32.totalorder %s514_s10, %s514_s10 }
   0xb   :  { %p521_p6 = por %p520_p5, %p519_p4 }
   0xd   :  { %p522_p7 = pnand %p521_p6, %p515_p3 }
   0xf   :  { %525 = shalt.err (!%p522_p7)
}
  0x10   :  { %s553_s11 = smov 128   ;;  %s554_s12 = smov 8  }
  0x11   :  { %25 = dma.hbm_to_vmem [thread:$0]  %s711_s0, 256, %s20_s25, [#allocation3], %s553_s11, %s553_s11, %s554_s12  }
  0x12   :  { %s555_s15 = smov [#allocation4]   ;;  %s526_s19 = scalar_lea.hbm %s712_s1, 256 }
  0x13   :  { %s31_s16 = sshll.u32 %s555_s15, 4  ;;  %p527_p8 = scmp.ne.s32.totalorder %s712_s1, %s526_s19  ;;  %s32_s16 = int_to_ptr.vmem [resolvable:$true] %s31_s16 }
  0x14   :  { %p530_p9 = scmp.lt.u32.totalorder %s526_s19, %s712_s1 }
  0x16   :  { %p532_p10 = pnand %p530_p9, %p527_p8 }
  0x18   :  { %535 = shalt.err (!%p532_p10)
}
  0x19   :  { %s536_s24 = scalar_lea.vmem %s32_s16, 256  ;;  %p541_p12 = scmp.lt.s32.totalorder %s32_s16, %s32_s16 }
  0x1a   :  { %p537_p11 = scmp.ne.s32.totalorder %s32_s16, %s536_s24  ;;  %p542_p13 = scmp.lt.s32.totalorder %s536_s24, %s536_s24 }
  0x1c   :  { %p543_p0 = por %p542_p13, %p541_p12 }
  0x1e   :  { %p544_p1 = pnand %p543_p0, %p537_p11 }
  0x20   :  { %547 = shalt.err (!%p544_p1)
}
  0x21   :  { %s556_s0 = smov 64   ;;  %s557_s25 = smov 4  }
  0x22   :  { %37 = dma.hbm_to_vmem [thread:$0]  %s712_s1, 256, %s32_s16, [#allocation5], %s556_s0, %s556_s0, %s557_s25  }
  0x23   :  { %548 = dma.done.wait [#allocation3], 256  }
  0x24   :  { %549 = vsyncadd [#allocation3], 4294967040 }
  0x25   :  { %550 = dma.done.wait [#allocation5], 256  }
  0x26   :  { %551 = vsyncadd [#allocation5], 4294967040  ;;  %v558_v0 = vmov 0.0   ;;  %vm559_vm0 = vmmov 0   ;;  %v478_v1 = vld [vmem:[#allocation4] sm:$0xff]   ;;  %v479_v2 = vld [vmem:[#allocation4 + $0x8] sm:$0xff]  }
  0x27   :  { %422 = vmatprep.subr.bf16.mxu0 %v558_v0  ;;  %426 = vmatprep.mubr.msk.bf16.mxu0 %vm559_vm0, %v558_v0  ;;  %v55_v3 = vld [vmem:[#allocation2] sm:$0xff]  ;;  %v56_v4 = vld [vmem:[#allocation2 + $0x8] sm:$0xff]  ;;  %vm81_vm1 = vcmask 261120   ;;  %v482_v8 = vld [vmem:[%s714_s3 + $0x10] sm:$0xff]   ;;  %vm368_vm2 = vcmask 64512  }
  0x28   :  { %430 = vmatprep.subr.bf16.mxu1 %v558_v0  ;;  %446 = vmatprep.mubr.msk.bf16.mxu1 %vm559_vm0, %v558_v0  ;;  %v480_v5 = vld [vmem:[%s714_s3] sm:$0xff]   ;;  %v57_v6 = vpack.c.bf16 %v56_v4, %v55_v3  ;;  %v481_v7 = vld [vmem:[%s714_s3 + $0x8] sm:$0xff]   ;;  %v483_v9 = vld [vmem:[%s714_s3 + $0x18] sm:$0xff]  }
  0x29   :  { %423 = vmatpush3.bf16.msra.mxu0 %v478_v1  ;;  %431 = vmatpush3.bf16.msra.mxu1 %v480_v5  ;;  %v484_v10 = vld [vmem:[%s714_s3 + $0x20] sm:$0xff]   ;;  %v485_v11 = vld [vmem:[%s714_s3 + $0x28] sm:$0xff]   ;;  %v486_v12 = vld [vmem:[%s714_s3 + $0x30] sm:$0xff]  }
  0x2a   :  { %424 = vmatprep.subr.bf16.mxu0 %v558_v0  ;;  %432 = vmatprep.subr.bf16.mxu1 %v558_v0  ;;  %v487_v13 = vld [vmem:[%s714_s3 + $0x38] sm:$0xff]   ;;  %v488_v14 = vld [vmem:[%s716_s5] sm:$0xff]   ;;  %v489_v15 = vld [vmem:[%s716_s5 + $0x8] sm:$0xff]  }
  0x2b   :  { %v490_v16 = vld [vmem:[%s716_s5 + $0x10] sm:$0xff]   ;;  %v491_v17 = vld [vmem:[%s716_s5 + $0x18] sm:$0xff]   ;;  %v492_v18 = vld [vmem:[%s716_s5 + $0x20] sm:$0xff]  }
  0x2c   :  { %v493_v19 = vld [vmem:[%s716_s5 + $0x28] sm:$0xff]   ;;  %v377_v20 = vld [vmem:[%s713_s2] ss:$0 sm:$0xff]  ;;  %v494_v30 = vld [vmem:[%s716_s5 + $0x30] sm:$0xff]  }
  0x2d   :  { %425 = vmatpush3.bf16.msra.mxu0 %v479_v2  ;;  %433 = vmatpush3.bf16.msra.mxu1 %v481_v7  ;;  %v495_v31 = vld [vmem:[%s716_s5 + $0x38] sm:$0xff]   ;;  %v381_v32 = vld [vmem:[%s715_s4] ss:$0 sm:$0xff] }
  0x2e   :  { %450 = vmatprep.subr.bf16.mxu0 %v558_v0  ;;  %434 = vmatprep.subr.bf16.mxu1 %v558_v0  ;;  %v390_v42 = vld [vmem:[%s717_s6] ss:$0 sm:$0xff] }
  0x30   :  { %427 = vmatmul.mubr.msk.bf16.vlgmr.msra.gmra.mrb[0].mxu0 %vm81_vm1, %v57_v6 }
  0x31   :  { %466 = vmatprep.mubr.msk.bf16.mxu0 %vm559_vm0, %v558_v0  ;;  %435 = vmatpush3.bf16.msra.mxu1 %v482_v8 }
  0x32   :  { %436 = vmatprep.subr.bf16.mxu1 %v558_v0  ;;  %451 = vmatpush3.bf16.msra.mxu0 %v488_v14 }
  0x33   :  { %452 = vmatprep.subr.bf16.mxu0 %v558_v0 }
  0x35   :  { %437 = vmatpush3.bf16.msra.mxu1 %v483_v9 }
  0x36   :  { %438 = vmatprep.subr.bf16.mxu1 %v558_v0  ;;  %453 = vmatpush3.bf16.msra.mxu0 %v489_v15 }
  0x37   :  { %454 = vmatprep.subr.bf16.mxu0 %v558_v0 }
  0x39   :  { %439 = vmatpush3.bf16.msra.mxu1 %v484_v10 }
  0x3a   :  { %440 = vmatprep.subr.bf16.mxu1 %v558_v0  ;;  %455 = vmatpush3.bf16.msra.mxu0 %v490_v16 }
  0x3b   :  { %456 = vmatprep.subr.bf16.mxu0 %v558_v0 }
  0x3d   :  { %441 = vmatpush3.bf16.msra.mxu1 %v485_v11 }
  0x3e   :  { %442 = vmatprep.subr.bf16.mxu1 %v558_v0  ;;  %457 = vmatpush3.bf16.msra.mxu0 %v491_v17 }
  0x3f   :  { %458 = vmatprep.subr.bf16.mxu0 %v558_v0 }
  0x41   :  { %443 = vmatpush3.bf16.msra.mxu1 %v486_v12 }
  0x42   :  { %444 = vmatprep.subr.bf16.mxu1 %v558_v0  ;;  %459 = vmatpush3.bf16.msra.mxu0 %v492_v18 }
  0x43   :  { %460 = vmatprep.subr.bf16.mxu0 %v558_v0 }
  0x45   :  { %445 = vmatpush3.bf16.msra.mxu1 %v487_v13 }
  0x46   :  { %461 = vmatpush3.bf16.msra.mxu0 %v493_v19 }
  0x47   :  { %462 = vmatprep.subr.bf16.mxu0 %v558_v0 }
  0x4a   :  { %463 = vmatpush3.bf16.msra.mxu0 %v494_v30 }
  0x4b   :  { %464 = vmatprep.subr.bf16.mxu0 %v558_v0 }
  0x4e   :  { %465 = vmatpush3.bf16.msra.mxu0 %v495_v31 }
 0x103   :  { %v119_v21 = vpop.f32.mrb[0].mxu0 }
 0x104   :  { %v120_v22 = vadd.f32 %v377_v20, %v119_v21  ;;  %v428_v23 = vpop.f32.mrb[1].mxu0 }
 0x105   :  { %v122_v24 = vpop.f32.mrb[2].mxu0 }
 0x106   :  { %v123_v25 = vadd.f32 %v377_v20, %v122_v24  ;;  %v429_v26 = vpop.f32.mrb[3].mxu0  ;;  %v126_v27 = vmax.f32 %v120_v22, 0.0 }
 0x108   :  { %v127_v28 = vmax.f32 %v123_v25, 0.0 }
 0x10a   :  { %v128_v29 = vpack.c.bf16 %v127_v28, %v126_v27 }
 0x10c   :  { %447 = vmatmul.mubr.bf16.vlgmr.msra.gmra.mrb[0].mxu1 %v128_v29 }
 0x1df   :  { %v234_v33 = vpop.f32.mrb[0].mxu1 }
 0x1e0   :  { %v235_v34 = vadd.f32 %v381_v32, %v234_v33  ;;  %v448_v35 = vpop.f32.mrb[1].mxu1 }
 0x1e1   :  { %v237_v36 = vpop.f32.mrb[2].mxu1 }
 0x1e2   :  { %v238_v37 = vadd.f32 %v381_v32, %v237_v36  ;;  %v449_v38 = vpop.f32.mrb[3].mxu1  ;;  %v241_v39 = vmax.f32 %v235_v34, 0.0 }
 0x1e4   :  { %v242_v40 = vmax.f32 %v238_v37, 0.0 }
 0x1e6   :  { %v243_v41 = vpack.c.bf16 %v242_v40, %v241_v39 }
 0x1e8   :  { %467 = vmatmul.mubr.bf16.vlgmr.msra.gmra.mrb[4].mxu0 %v243_v41 }
 0x2bb   :  { %v349_v43 = vpop.f32.mrb[4].mxu0 }
 0x2bc   :  { %v350_v44 = vadd.f32 %v390_v42, %v349_v43  ;;  %v468_v45 = vpop.f32.mrb[5].mxu0 }
 0x2bd   :  { %v352_v46 = vpop.f32.mrb[6].mxu0 }
 0x2be   :  { %v399_v47 = vmul.f32 -1.442695, %v350_v44  ;;  %v353_v48 = vadd.f32 %v390_v42, %v352_v46  ;;  %v469_v49 = vpop.f32.mrb[7].mxu0 }
 0x2c0   :  { %496 = vpow2.f32 %v399_v47  ;;  %v400_v50 = vmul.f32 -1.442695, %v353_v48 }
 0x2c2   :  { %498 = vpow2.f32 %v400_v50 }
 0x2ca   :  { %v497_v51 = vpop.eup %496 }
 0x2cb   :  { %v362_v52 = vadd.f32 1.0, %v497_v51 }
 0x2cc   :  { %v499_v53 = vpop.eup %498 }
 0x2cd   :  { %500 = vrcp.f32 %v362_v52  ;;  %v363_v54 = vadd.f32 1.0, %v499_v53 }
 0x2cf   :  { %502 = vrcp.f32 %v363_v54 }
 0x2d7   :  { %v501_v55 = vpop.eup %500 }
 0x2d8   :  { %369 = vst.msk [vmem:[%s718_s7] sm:$0xff] %vm368_vm2, %v501_v55 }
 0x2d9   :  { %v503_v56 = vpop.eup %502 }
 0x2da   :  { %370 = vst.msk [vmem:[%s718_s7 + $0x8] sm:$0xff] %vm368_vm2, %v503_v56 }
 0x2db   :  { %375 = vsyncpa [#allocation3], 1 }
 0x2dc   :  { %376 = vsyncpa [#allocation5], 1 }

</bundles_post_ra>
